<compile_context>
chip_gen: v7x
topology: tpu7x:2x2x1
jax: 0.10.0
libtpu: 0.0.40
codegen_flags: <defaults>
</compile_context>

<pallas_src>
import jax
import jax.numpy as jnp
from jax.experimental import pallas as pl
from jax.experimental.pallas import tpu as pltpu


def _linear_kernel(x_ref, w_ref, b_ref, o_ref):
    """y = sum_d w[d] * x[:, d] + b   via unrolled scalar-broadcast FMAs.

    x_ref: (B, D) f32 in VMEM
    w_ref: (D,)   f32 in SMEM   (PyTorch Linear weight row, flattened)
    b_ref: (1,)   f32 in SMEM   (scalar bias)
    o_ref: (B, 1) f32 in VMEM
    """
    x = x_ref[...]                              # single vld of the whole tile
    D = x.shape[1]
    acc = x[:, 0:1] * w_ref[0]                  # scalar-broadcast multiply (VPU)
    for d in range(1, D):                       # D=4: fully unrolled at trace time
        acc = acc + x[:, d:d + 1] * w_ref[d]
    o_ref[...] = acc + b_ref[0]                 # scalar bias add


def silly_cartpole_forward(x, weight, bias):
    """Pallas equivalent of `self.fc(x)` with fc = nn.Linear(obs_dim, 1).

    x:      (B, D) float32
    weight: (1, D) float32   (PyTorch Linear layout; flattened to (D,) for SMEM)
    bias:   (1,)   float32
    returns (B, 1) float32
    """
    B, D = x.shape

    # Keep all in-kernel math in f32 (upcast wrapper-side only if needed).
    if x.dtype != jnp.float32:
        x = x.astype(jnp.float32)
    w_flat = weight.reshape(D)
    if w_flat.dtype != jnp.float32:
        w_flat = w_flat.astype(jnp.float32)
    if bias.dtype != jnp.float32:
        bias = bias.astype(jnp.float32)

    return pl.pallas_call(
        _linear_kernel,
        out_shape=jax.ShapeDtypeStruct((B, 1), jnp.float32),
        in_specs=[
            pl.BlockSpec(memory_space=pltpu.MemorySpace.VMEM),   # x  -> VMEM (whole array)
            pl.BlockSpec(memory_space=pltpu.MemorySpace.SMEM),   # w  -> SMEM (D,) scalars
            pl.BlockSpec(memory_space=pltpu.MemorySpace.SMEM),   # b  -> SMEM scalar
        ],
        out_specs=pl.BlockSpec(memory_space=pltpu.MemorySpace.VMEM),
    )(x, w_flat, bias)


def make_params(obs_dim: int, fixed_action: float = 2.0,
                action_low: float = -10.0, action_high: float = 10.0):
    """Deterministic init matching the PyTorch module's __init__."""
    fixed_action = float(min(max(fixed_action, action_low), action_high))  # np.clip at init
    weight = jnp.zeros((1, obs_dim), dtype=jnp.float32)         # init.constant_(fc.weight, 0)
    bias = jnp.full((1,), fixed_action, dtype=jnp.float32)      # init.constant_(fc.bias, fixed_action)
    return weight, bias


if __name__ == "__main__":
    # CartPole observation: (x, x_dot, theta, theta_dot) -> obs_dim = 4.
    batch, obs_dim = 2, 4
    key = jax.random.PRNGKey(0)
    x = jax.random.normal(key, (batch, obs_dim), dtype=jnp.float32)

    weight, bias = make_params(obs_dim, fixed_action=2.0)

    out = silly_cartpole_forward(x, weight, bias)
    out = jax.block_until_ready(out)

    # Reference check in plain JAX (x @ W.T + b), same semantics as fc(x).
    ref = x @ weight.T + bias
    assert out.shape == (batch, 1)
    assert jnp.allclose(out, ref, atol=1e-6), (out, ref)

    # Also sanity-check against a nonzero weight so the unrolled FMA path is exercised.
    w2 = jnp.arange(obs_dim, dtype=jnp.float32).reshape(1, obs_dim) * 0.1
    out2 = jax.block_until_ready(silly_cartpole_forward(x, w2, bias))
    ref2 = x @ w2.T + bias
    assert jnp.allclose(out2, ref2, atol=1e-6), (out2, ref2)

    print("KERNEL_OK")
</pallas_src>

<mosaic_0001>
module attributes {stable_mosaic.version = 11 : i64} {
  func.func @_linear_kernel(%arg0: memref<2x4xf32, #tpu.memory_space<vmem>>, %arg1: memref<4xf32, #tpu.memory_space<smem>>, %arg2: memref<1xf32, #tpu.memory_space<smem>>, %arg3: memref<2x1xf32, #tpu.memory_space<vmem>>) attributes {dimension_semantics = [], scalar_prefetch = 0 : i64, scratch_operands = 0 : i64, tpu.core_type = #tpu.core_type<tc>} {
    %c0 = arith.constant 0 : index
    %c0_0 = arith.constant 0 : index
    %0 = vector.load %arg0[%c0, %c0_0] : memref<2x4xf32, #tpu.memory_space<vmem>>, vector<2x4xf32>
    %1 = vector.extract_strided_slice %0 {offsets = [0, 0], sizes = [2, 1], strides = [1, 1]} : vector<2x4xf32> to vector<2x1xf32>
    %c0_1 = arith.constant 0 : index
    %2 = memref.load %arg1[%c0_1] : memref<4xf32, #tpu.memory_space<smem>>
    %3 = vector.broadcast %2 : f32 to vector<2x1xf32>
    %4 = arith.mulf %1, %3 : vector<2x1xf32>
    %5 = vector.extract_strided_slice %0 {offsets = [0, 1], sizes = [2, 1], strides = [1, 1]} : vector<2x4xf32> to vector<2x1xf32>
    %c1 = arith.constant 1 : index
    %6 = memref.load %arg1[%c1] : memref<4xf32, #tpu.memory_space<smem>>
    %7 = vector.broadcast %6 : f32 to vector<2x1xf32>
    %8 = arith.mulf %5, %7 : vector<2x1xf32>
    %9 = arith.addf %4, %8 : vector<2x1xf32>
    %10 = vector.extract_strided_slice %0 {offsets = [0, 2], sizes = [2, 1], strides = [1, 1]} : vector<2x4xf32> to vector<2x1xf32>
    %c2 = arith.constant 2 : index
    %11 = memref.load %arg1[%c2] : memref<4xf32, #tpu.memory_space<smem>>
    %12 = vector.broadcast %11 : f32 to vector<2x1xf32>
    %13 = arith.mulf %10, %12 : vector<2x1xf32>
    %14 = arith.addf %9, %13 : vector<2x1xf32>
    %15 = vector.extract_strided_slice %0 {offsets = [0, 3], sizes = [2, 1], strides = [1, 1]} : vector<2x4xf32> to vector<2x1xf32>
    %c3 = arith.constant 3 : index
    %16 = memref.load %arg1[%c3] : memref<4xf32, #tpu.memory_space<smem>>
    %17 = vector.broadcast %16 : f32 to vector<2x1xf32>
    %18 = arith.mulf %15, %17 : vector<2x1xf32>
    %19 = arith.addf %14, %18 : vector<2x1xf32>
    %c0_2 = arith.constant 0 : index
    %20 = memref.load %arg2[%c0_2] : memref<1xf32, #tpu.memory_space<smem>>
    %21 = vector.broadcast %20 : f32 to vector<2x1xf32>
    %22 = arith.addf %19, %21 : vector<2x1xf32>
    %c0_3 = arith.constant 0 : index
    %c0_4 = arith.constant 0 : index
    %23 = vector.load %arg3[%c0_3, %c0_4] : memref<2x1xf32, #tpu.memory_space<vmem>>, vector<2x1xf32>
    tpu.vector_store %arg3[%c0_3, %c0_4], %22 {strides = array<i32>} : memref<2x1xf32, #tpu.memory_space<vmem>>, vector<2x1xf32>,
    return
  }
}

</mosaic_0001>

<bundles_post_ra>
// kernel: tpu_custom_call.1
= control target key start
LH: loop header
LB: loop body
LE: loop exit
PB: predicated region body
PF: predicated region fallthrough
CT: control target
= control target key end

     0   :  { %9 = vsyncpa [#allocation4], 0  ;;  %s123_s0 = inlined_call_operand.vmem [shape: f32[2,4], index: 0, kind: input, shape index: {}]   ;;  %s124_s1 = inlined_call_operand.vmem [shape: f32[4], index: 1, kind: input, shape index: {}]   ;;  %s125_s2 = inlined_call_operand.<no memory space> [shape: f32[1], index: 2, kind: input, shape index: {}]   ;;  %s126_s3 = inlined_call_operand.vmem [shape: f32[2,1], index: 3, kind: output, shape index: {}]  }
   0x1   :  { %s18_s14 = sshll.u32 %s124_s1, 4  ;;  %s19_s14 = int_to_ptr.vmem [resolvable:$true] %s18_s14 }
   0x2   :  { %s73_s15 = scalar_lea.vmem %s19_s14, 16  ;;  %p78_p1 = scmp.lt.s32.totalorder %s19_s14, %s19_s14 }
   0x3   :  { %p74_p0 = scmp.ne.s32.totalorder %s19_s14, %s73_s15  ;;  %p79_p2 = scmp.lt.s32.totalorder %s73_s15, %s73_s15 }
   0x5   :  { %p80_p3 = por %p79_p2, %p78_p1 }
   0x7   :  { %p81_p4 = pnand %p80_p3, %p74_p0 }
   0x9   :  { %84 = shalt.err (!%p81_p4)
}
   0xa   :  { %s87_s16 = smov [#allocation3]  }
   0xb   :  { %21 = dma.vmem_to_smem %s19_s14, 16, %s87_s16, [#allocation4]  }
   0xc   :  { %85 = dma.done.wait [#allocation4], 16  }
   0xd   :  { %86 = vsyncadd [#allocation4], 4294967280 }
   0xe   :  { %27 = sfence }
   0xf   :  { %s66_s17 = sld [smem:[#allocation3 + $0x1]]  ;;  %s67_s18 = sld [smem:[#allocation3 + $0x2]]  ;;  %v28_v0 = vld [vmem:[%s123_s0] sm:$0x3]  ;;  %v57_v14 = vstv %s125_s2  ;;  %vm59_vm0 = vcmask 1024  }
  0x10   :  { %s68_s19 = sld [smem:[#allocation3 + $0x3]]  ;;  %s88_s1 = smov 127  }
  0x11   :  { %s89_s22 = smov 125   ;;  %s90_s23 = smov 126  }
  0x12   :  { %s29_s24 = sld [smem:[#allocation3]] }
  0x15   :  { %v33_v1 = vstv %s66_s17  ;;  %v41_v3 = vstv %s67_s18 }
  0x16   :  { %v34_v2 = vmul.f32 %v33_v1, %v28_v0  ;;  %v49_v4 = vstv %s68_s19  ;;  %v42_v5 = vmul.f32 %v41_v3, %v28_v0 }
  0x17   :  { %v50_v6 = vmul.f32 %v49_v4, %v28_v0 }
  0x18   :  { %36 = vrot.lane.b32.xlu0 %v34_v2, %s88_s1  ;;  %v30_v7 = vstv %s29_s24 }
  0x19   :  { %52 = vrot.lane.b32.xlu1 %v50_v6, %s89_s22  ;;  %v31_v8 = vmul.f32 %v30_v7, %v28_v0 }
  0x1c   :  { %44 = vrot.lane.b32.xlu0 %v42_v5, %s90_s23 }
  0x8a   :  { %v37_v9 = vpop.permute.xlu0 %36 }
  0x8b   :  { %v39_v10 = vadd.f32 %v37_v9, %v31_v8  ;;  %v53_v12 = vpop.permute.xlu1 %52 }
  0x8e   :  { %v45_v11 = vpop.permute.xlu0 %44 }
  0x8f   :  { %v47_v13 = vadd.f32 %v45_v11, %v39_v10 }
  0x91   :  { %v55_v15 = vadd.f32 %v53_v12, %v47_v13 }
  0x93   :  { %v58_v16 = vadd.f32 %v57_v14, %v55_v15 }
  0x95   :  { %60 = vst.msk [vmem:[%s126_s3] sm:$0x3] %vm59_vm0, %v58_v16 }
  0x96   :  { %65 = vsyncpa [#allocation4], 1 }

</bundles_post_ra>
